<compile_context>
chip_gen: v5e
topology: v5e:2x2
jax: 0.10.0
libtpu: 0.0.40
codegen_flags: <defaults>
</compile_context>

<pallas_src>
import jax
import jax.numpy as jnp
from jax.experimental import pallas as pl
from jax.experimental.pallas import tpu as pltpu

HIDDEN_SIZE = 40
INPUT_SIZE = 2
OUTPUT_SIZE = 1
DROPOUT_PROB = 0.5


def _forward(x, w1, b1, w2, b2, w3t, b3, keep_scale):
    # layer1 (K=2): two broadcast FMAs on the VPU instead of a degenerate MXU pass
    h = w1[:, 0:1] * x[0:1, :] + w1[:, 1:2] * x[1:2, :] + b1   # (40, tile_n)
    h = jnp.maximum(h, 0.0)

    # layer2 (40x40): the only matmul that earns an MXU pass
    h = jnp.dot(w2, h, preferred_element_type=jnp.float32) + b2
    h = jnp.maximum(h, 0.0)                                     # (40, tile_n)

    # dropout (train mode only); mask already scaled by 1/(1-p)
    if keep_scale is not None:
        h = h * keep_scale

    # output layer (N=1): VPU multiply + sublane reduce -> lane-dense (1, tile_n)
    return jnp.sum(w3t * h, axis=0, keepdims=True) + b3


def _eval_kernel(x_ref, w1_ref, b1_ref, w2_ref, b2_ref, w3_ref, b3_ref, o_ref):
    out = _forward(x_ref[...], w1_ref[...], b1_ref[...], w2_ref[...],
                   b2_ref[...], w3_ref[...], b3_ref[...], None)
    o_ref[...] = out.astype(o_ref.dtype)


def _train_kernel(x_ref, mask_ref, w1_ref, b1_ref, w2_ref, b2_ref, w3_ref,
                  b3_ref, o_ref):
    out = _forward(x_ref[...], w1_ref[...], b1_ref[...], w2_ref[...],
                   b2_ref[...], w3_ref[...], b3_ref[...], mask_ref[...])
    o_ref[...] = out.astype(o_ref.dtype)


def _make_keep_scale(key, hid, n_pad, dropout_prob=DROPOUT_PROB):
    keep = jax.random.bernoulli(key, 1.0 - dropout_prob, (hid, n_pad))
    return keep.astype(jnp.float32) * (1.0 / (1.0 - dropout_prob))


def regression_model_forward(x, params, *, training=False, dropout_key=None,
                             tile_n=1024):
    """x: (N, INPUT_SIZE) float32.  Returns (N, OUTPUT_SIZE) float32."""
    w1, b1, w2, b2, w3t, b3 = params
    n, fin = x.shape
    assert fin == INPUT_SIZE

    hid = w1.shape[0]
    out_f = w3t.shape[1]

    # batch-on-lanes layout + pad batch up to a multiple of tile_n
    n_pad = tile_n * pl.cdiv(n, tile_n)
    xt = x.T                                         # (2, N) one-time transpose
    if n_pad != n:
        xt = jnp.pad(xt, ((0, 0), (0, n_pad - n)))

    grid = (n_pad // tile_n,)
    full = lambda i: (0, 0)                          # whole (small) weight each step
    x_spec = pl.BlockSpec((fin, tile_n), lambda i: (0, i))
    out_spec = pl.BlockSpec((out_f, tile_n), lambda i: (0, i))
    weight_specs = [
        pl.BlockSpec((hid, fin), full),              # W1  (40, 2)
        pl.BlockSpec((hid, 1), full),                # b1  (40, 1)
        pl.BlockSpec((hid, hid), full),              # W2  (40, 40)
        pl.BlockSpec((hid, 1), full),                # b2  (40, 1)
        pl.BlockSpec((hid, out_f), full),            # W3^T (40, 1)
        pl.BlockSpec((out_f, 1), full),              # b3  (1, 1)
    ]

    if training:
        if dropout_key is None:
            dropout_key = jax.random.PRNGKey(0)
        keep_scale = _make_keep_scale(dropout_key, hid, n_pad)
        kernel = _train_kernel
        in_specs = [x_spec,
                    pl.BlockSpec((hid, tile_n), lambda i: (0, i))] + weight_specs
        args = (xt, keep_scale, w1, b1, w2, b2, w3t, b3)
    else:
        kernel = _eval_kernel
        in_specs = [x_spec] + weight_specs
        args = (xt, w1, b1, w2, b2, w3t, b3)

    out = pl.pallas_call(
        kernel,
        out_shape=jax.ShapeDtypeStruct((out_f, n_pad), jnp.float32),
        grid_spec=pltpu.PrefetchScalarGridSpec(
            num_scalar_prefetch=0,
            grid=grid,
            in_specs=in_specs,
            out_specs=out_spec,
        ),
        compiler_params=pltpu.CompilerParams(
            dimension_semantics=("parallel",)),
    )(*args)

    return out[:, :n].T                              # (N, 1)


def init_params(key, input_size=INPUT_SIZE, hidden_size=HIDDEN_SIZE,
                output_size=OUTPUT_SIZE):
    """Init mimicking nn.Linear's U(-1/sqrt(fan_in), 1/sqrt(fan_in)).

    Weights stay in PyTorch (out, in) layout; w3 is returned transposed to a
    (hidden, 1) column, biases as (out, 1) columns (feature-major layout)."""
    keys = jax.random.split(key, 6)

    def linear(kw, kb, fan_in, fan_out):
        bound = 1.0 / (fan_in ** 0.5)
        w = jax.random.uniform(kw, (fan_out, fan_in), jnp.float32, -bound, bound)
        b = jax.random.uniform(kb, (fan_out, 1), jnp.float32, -bound, bound)
        return w, b

    w1, b1 = linear(keys[0], keys[1], input_size, hidden_size)    # (40,2), (40,1)
    w2, b2 = linear(keys[2], keys[3], hidden_size, hidden_size)   # (40,40),(40,1)
    w3, b3 = linear(keys[4], keys[5], hidden_size, output_size)   # (1,40), (1,1)
    return (w1, b1, w2, b2, w3.T, b3)


def _reference(x, params, keep_scale_t=None):
    w1, b1, w2, b2, w3t, b3 = params
    h = jnp.maximum(x @ w1.T + b1.T, 0.0)
    h = jnp.maximum(h @ w2.T + b2.T, 0.0)
    if keep_scale_t is not None:
        h = h * keep_scale_t                          # (N, hidden) mask
    return h @ w3t + b3.T


if __name__ == "__main__":
    key = jax.random.PRNGKey(0)
    k_param, k_x, k_drop = jax.random.split(key, 3)

    params = init_params(k_param)

    # deterministic inputs: 2000 points in [-10, 10)^2 (same distribution as the
    # synthetic data in the original script, smaller scale); 2000 is deliberately
    # NOT a multiple of tile_n to exercise the padding path.
    n = 2000
    tile_n = 1024
    x = 20.0 * jax.random.uniform(k_x, (n, INPUT_SIZE), jnp.float32) - 10.0

    # eval-mode forward (dropout = identity) vs. pure-JAX reference
    y = regression_model_forward(x, params, training=False, tile_n=tile_n)
    y = jax.block_until_ready(y)
    assert y.shape == (n, OUTPUT_SIZE)
    y_ref = _reference(x, params)
    assert jnp.allclose(y, y_ref, atol=1e-3, rtol=1e-4), "eval mismatch vs reference"

    # training (dropout) path: kernel and reference share the same keep mask
    y_tr = regression_model_forward(x, params, training=True,
                                    dropout_key=k_drop, tile_n=tile_n)
    y_tr = jax.block_until_ready(y_tr)
    assert y_tr.shape == (n, OUTPUT_SIZE)
    n_pad = tile_n * pl.cdiv(n, tile_n)
    keep_scale = _make_keep_scale(k_drop, HIDDEN_SIZE, n_pad)
    y_tr_ref = _reference(x, params, keep_scale_t=keep_scale[:, :n].T)
    assert jnp.allclose(y_tr, y_tr_ref, atol=1e-3, rtol=1e-4), "train mismatch vs reference"
    assert bool(jnp.all(jnp.isfinite(y_tr)))

    print("KERNEL_OK")
</pallas_src>

<mosaic_0001>
module attributes {stable_mosaic.version = 11 : i64} {
  func.func @_eval_kernel(%arg0: i32, %arg1: memref<2x1024xf32, #tpu.memory_space<vmem>>, %arg2: memref<40x2xf32, #tpu.memory_space<vmem>>, %arg3: memref<40x1xf32, #tpu.memory_space<vmem>>, %arg4: memref<40x40xf32, #tpu.memory_space<vmem>>, %arg5: memref<40x1xf32, #tpu.memory_space<vmem>>, %arg6: memref<40x1xf32, #tpu.memory_space<vmem>>, %arg7: memref<1x1xf32, #tpu.memory_space<vmem>>, %arg8: memref<1x1024xf32, #tpu.memory_space<vmem>>) attributes {dimension_semantics = [#tpu.dimension_semantics<parallel>], iteration_bounds = array<i64: 2>, scalar_prefetch = 0 : i64, scratch_operands = 0 : i64, tpu.core_type = #tpu.core_type<tc>, window_params = [{transform_indices = @transform_0, window_bounds = array<i64: 2, 1024>}, {pipeline_mode = #tpu.pipeline_mode<synchronous>, transform_indices = @transform_1, window_bounds = array<i64: 40, 2>}, {pipeline_mode = #tpu.pipeline_mode<synchronous>, transform_indices = @transform_2, window_bounds = array<i64: 40, 1>}, {pipeline_mode = #tpu.pipeline_mode<synchronous>, transform_indices = @transform_3, window_bounds = array<i64: 40, 40>}, {pipeline_mode = #tpu.pipeline_mode<synchronous>, transform_indices = @transform_4, window_bounds = array<i64: 40, 1>}, {pipeline_mode = #tpu.pipeline_mode<synchronous>, transform_indices = @transform_5, window_bounds = array<i64: 40, 1>}, {pipeline_mode = #tpu.pipeline_mode<synchronous>, transform_indices = @transform_6, window_bounds = array<i64: 1, 1>}, {transform_indices = @transform_7, window_bounds = array<i64: 1, 1024>}]} {
    %c0 = arith.constant 0 : index
    %c0_0 = arith.constant 0 : index
    %0 = vector.load %arg1[%c0, %c0_0] : memref<2x1024xf32, #tpu.memory_space<vmem>>, vector<2x1024xf32>
    %c0_1 = arith.constant 0 : index
    %c0_2 = arith.constant 0 : index
    %1 = vector.load %arg2[%c0_1, %c0_2] : memref<40x2xf32, #tpu.memory_space<vmem>>, vector<40x2xf32>
    %c0_3 = arith.constant 0 : index
    %c0_4 = arith.constant 0 : index
    %2 = vector.load %arg3[%c0_3, %c0_4] : memref<40x1xf32, #tpu.memory_space<vmem>>, vector<40x1xf32>
    %c0_5 = arith.constant 0 : index
    %c0_6 = arith.constant 0 : index
    %3 = vector.load %arg4[%c0_5, %c0_6] : memref<40x40xf32, #tpu.memory_space<vmem>>, vector<40x40xf32>
    %c0_7 = arith.constant 0 : index
    %c0_8 = arith.constant 0 : index
    %4 = vector.load %arg5[%c0_7, %c0_8] : memref<40x1xf32, #tpu.memory_space<vmem>>, vector<40x1xf32>
    %c0_9 = arith.constant 0 : index
    %c0_10 = arith.constant 0 : index
    %5 = vector.load %arg6[%c0_9, %c0_10] : memref<40x1xf32, #tpu.memory_space<vmem>>, vector<40x1xf32>
    %c0_11 = arith.constant 0 : index
    %c0_12 = arith.constant 0 : index
    %6 = vector.load %arg7[%c0_11, %c0_12] : memref<1x1xf32, #tpu.memory_space<vmem>>, vector<1x1xf32>
    %7 = vector.extract_strided_slice %1 {offsets = [0, 0], sizes = [40, 1], strides = [1, 1]} : vector<40x2xf32> to vector<40x1xf32>
    %8 = vector.extract_strided_slice %0 {offsets = [0, 0], sizes = [1, 1024], strides = [1, 1]} : vector<2x1024xf32> to vector<1x1024xf32>
    %9 = vector.broadcast %7 : vector<40x1xf32> to vector<40x1024xf32>
    %10 = vector.broadcast %8 : vector<1x1024xf32> to vector<40x1024xf32>
    %11 = arith.mulf %9, %10 : vector<40x1024xf32>
    %12 = vector.extract_strided_slice %1 {offsets = [0, 1], sizes = [40, 1], strides = [1, 1]} : vector<40x2xf32> to vector<40x1xf32>
    %13 = vector.extract_strided_slice %0 {offsets = [1, 0], sizes = [1, 1024], strides = [1, 1]} : vector<2x1024xf32> to vector<1x1024xf32>
    %14 = vector.broadcast %12 : vector<40x1xf32> to vector<40x1024xf32>
    %15 = vector.broadcast %13 : vector<1x1024xf32> to vector<40x1024xf32>
    %16 = arith.mulf %14, %15 : vector<40x1024xf32>
    %17 = arith.addf %11, %16 : vector<40x1024xf32>
    %18 = vector.broadcast %2 : vector<40x1xf32> to vector<40x1024xf32>
    %19 = arith.addf %17, %18 : vector<40x1024xf32>
    %cst = arith.constant 0.000000e+00 : f32
    %20 = vector.broadcast %cst : f32 to vector<40x1024xf32>
    %21 = arith.maximumf %19, %20 : vector<40x1024xf32>
    %cst_13 = arith.constant dense<0.000000e+00> : vector<40x1024xf32>
    %22 = tpu.matmul %3, %21, %cst_13 {dimension_numbers = #tpu.dot_dimension_numbers<[1], [0], [0], [1], [0, 0, 1, 1], [], []>} : vector<40x40xf32>, vector<40x1024xf32>, vector<40x1024xf32> -> vector<40x1024xf32>
    %23 = vector.broadcast %4 : vector<40x1xf32> to vector<40x1024xf32>
    %24 = arith.addf %22, %23 : vector<40x1024xf32>
    %cst_14 = arith.constant 0.000000e+00 : f32
    %25 = vector.broadcast %cst_14 : f32 to vector<40x1024xf32>
    %26 = arith.maximumf %24, %25 : vector<40x1024xf32>
    %27 = vector.broadcast %5 : vector<40x1xf32> to vector<40x1024xf32>
    %28 = arith.mulf %27, %26 : vector<40x1024xf32>
    %cst_15 = arith.constant dense<0.000000e+00> : vector<1024xf32>
    %29 = vector.multi_reduction <add>, %28, %cst_15 [0] : vector<40x1024xf32> to vector<1024xf32>
    %30 = vector.shape_cast %29 : vector<1024xf32> to vector<1x1024xf32>
    %31 = vector.broadcast %6 : vector<1x1xf32> to vector<1x1024xf32>
    %32 = arith.addf %30, %31 : vector<1x1024xf32>
    %c0_16 = arith.constant 0 : index
    %c0_17 = arith.constant 0 : index
    %33 = vector.load %arg8[%c0_16, %c0_17] : memref<1x1024xf32, #tpu.memory_space<vmem>>, vector<1x1024xf32>
    tpu.vector_store %arg8[%c0_16, %c0_17], %32 {strides = array<i32>} : memref<1x1024xf32, #tpu.memory_space<vmem>>, vector<1x1024xf32>,
    return
  }
  func.func @transform_0(%arg0: i32) -> (i32, i32) {
    %c0_i32 = arith.constant 0 : i32
    %c0_i32_0 = arith.constant 0 : i32
    return %c0_i32, %arg0 : i32, i32
  }
  func.func @transform_1(%arg0: i32) -> (i32, i32) {
    %c0_i32 = arith.constant 0 : i32
    %c0_i32_0 = arith.constant 0 : i32
    %c0_i32_1 = arith.constant 0 : i32
    return %c0_i32, %c0_i32_0 : i32, i32
  }
  func.func @transform_2(%arg0: i32) -> (i32, i32) {
    %c0_i32 = arith.constant 0 : i32
    %c0_i32_0 = arith.constant 0 : i32
    %c0_i32_1 = arith.constant 0 : i32
    return %c0_i32, %c0_i32_0 : i32, i32
  }
  func.func @transform_3(%arg0: i32) -> (i32, i32) {
    %c0_i32 = arith.constant 0 : i32
    %c0_i32_0 = arith.constant 0 : i32
    %c0_i32_1 = arith.constant 0 : i32
    return %c0_i32, %c0_i32_0 : i32, i32
  }
  func.func @transform_4(%arg0: i32) -> (i32, i32) {
    %c0_i32 = arith.constant 0 : i32
    %c0_i32_0 = arith.constant 0 : i32
    %c0_i32_1 = arith.constant 0 : i32
    return %c0_i32, %c0_i32_0 : i32, i32
  }
  func.func @transform_5(%arg0: i32) -> (i32, i32) {
    %c0_i32 = arith.constant 0 : i32
    %c0_i32_0 = arith.constant 0 : i32
    %c0_i32_1 = arith.constant 0 : i32
    return %c0_i32, %c0_i32_0 : i32, i32
  }
  func.func @transform_6(%arg0: i32) -> (i32, i32) {
    %c0_i32 = arith.constant 0 : i32
    %c0_i32_0 = arith.constant 0 : i32
    %c0_i32_1 = arith.constant 0 : i32
    return %c0_i32, %c0_i32_0 : i32, i32
  }
  func.func @transform_7(%arg0: i32) -> (i32, i32) {
    %c0_i32 = arith.constant 0 : i32
    %c0_i32_0 = arith.constant 0 : i32
    return %c0_i32, %arg0 : i32, i32
  }
}

</mosaic_0001>

<bundles_post_ra>
// kernel: tpu_custom_call.1
= control target key start
LH: loop header
LB: loop body
LE: loop exit
PB: predicated region body
PF: predicated region fallthrough
CT: control target
= control target key end

     0   :  { %s2074_s0 = inlined_call_operand.vmem [shape: f32[2,2048], index: 0, kind: input, shape index: {}]   ;;  %s2075_s1 = inlined_call_operand.vmem [shape: f32[40,2], index: 1, kind: input, shape index: {}]   ;;  %s2076_s2 = inlined_call_operand.vmem [shape: f32[40,1], index: 2, kind: input, shape index: {}]   ;;  %s2077_s3 = inlined_call_operand.vmem [shape: f32[40,40], index: 3, kind: input, shape index: {}]   ;;  %s2078_s4 = inlined_call_operand.vmem [shape: f32[40,1], index: 4, kind: input, shape index: {}]   ;;  %s2079_s5 = inlined_call_operand.vmem [shape: f32[40,1], index: 5, kind: input, shape index: {}]   ;;  %s2080_s6 = inlined_call_operand.<no memory space> [shape: f32[1,1], index: 6, kind: input, shape index: {}]   ;;  %s2081_s7 = inlined_call_operand.hbm [shape: f32[1,2048], index: 7, kind: output, shape index: {}]  }
   0x1   :  { %v12_v0 = vstv %s2080_s6 }
   0x2   :  { %13 = vst [vmem:[#allocation2] sm:$0x1] %v12_v0 }
   0x3   :  { %14 = vsyncpa [#allocation4], 0 }
   0x4   :  { %16 = vsyncpa [#allocation4 + $0x1], 0  ;;  %s1442_s26 = smov 0   ;;  %s1444_s27 = smov 0  }
   0x5   :  { %s1446_s28 = smov 0   ;;  %s1448_s29 = smov 0  }
   0x6 LB: > { %s1231_s6 = sadd.s32 4294967295, %s1395_s29   ;;  %s1232_s30 = sadd.s32 4294967294, %s1395_s29   ;;  %s1395_s29 = sphi %s1448_s29, %s2106_s29   ;;  %s1391_s28 = sphi %s1446_s28, %s2105_s28   ;;  %s1387_s27 = sphi %s1444_s27, %s2104_s27   ;;  %s1383_s26 = sphi %s1442_s26, %s2103_s26  }
   0x7   : > { %s1465_s8 = sadd.s32 1, %s1395_s29   ;;  %s181_s9 = sadd.s32 1, %s1391_s28 }
   0x8   : > { %s178_s10 = ssub.s32 %s1395_s29, %s1465_s8  ;;  %p191_p0 = scmp.ne.s32.totalorder %s1391_s28, %s1387_s27 }
   0x9   : > { %p179_p1 = scmp.eq.s32.totalorder %s178_s10, 0  ;;  %p192_p2 = scmp.eq.s32.totalorder %s1231_s6, 1 }
   0xa   : > { %p197_p3 = scmp.ne.s32.totalorder %s1387_s27, %s1383_s26  ;;  %p198_p4 = scmp.eq.s32.totalorder %s1232_s30, 1 }
   0xb   : > { %s1477_s11 = scalar_select %p179_p1, %s1391_s28, %s181_s9  }
   0xc   : > { %p1479_p5 = por %p192_p2, %p191_p0  ;;  %p1483_p6 = por %p198_p4, %p197_p3 }
   0xd   : > { %p1235_p7 = scmp.ge.s32.totalorder %s1395_s29, 1  ;;  %p243_p8 = scmp.lt.s32.totalorder %s1395_s29, 3 }
   0xf   : > { %p244_p9 = pnand %p1235_p7, %p243_p8 }
  0x11   : > { %247 = sbr.rel (%p244_p9) target bundleno = 421 (0x1a5), region = 48 }
  0x16   : > { %v288_v1 = vld [vmem:[%s2075_s1 + $0x20] sm:$0xff]  ;;  %v287_v2 = vld [vmem:[%s2075_s1 + $0x18] sm:$0xff]  ;;  %v286_v3 = vld [vmem:[%s2075_s1 + $0x10] sm:$0xff]  ;;  %v1397_v4 = vmov 0   ;;  %v1398_v5 = vmov 1   ;;  %s1551_s24 = sshll.u32 %s1231_s6, 3 }
  0x17   : > { %1328 = vset.pattern.permute.xlu2 %v1397_v4  ;;  %1326 = vset.pattern.permute.xlu1 %v1397_v4  ;;  %v285_v6 = vld [vmem:[%s2075_s1 + $0x8] sm:$0xff]  ;;  %v293_v7 = vld [vmem:[%s2076_s2 + $0x20] sm:$0xff]  ;;  %v292_v9 = vld [vmem:[%s2076_s2 + $0x18] sm:$0xff]  ;;  %p276_p10 = scmp.lt.s32.totalorder %s1551_s24, 15  ;;  %vm655_vm0 = vcmask 326656   ;;  %vm1141_vm1 = vcmask 1040384  }
  0x18   : > { %1324 = vset.pattern.permute.xlu0 %v1397_v4  ;;  %327 = vperm.xlu1 %1326, %v287_v2   ;;  %v284_v8 = vld [vmem:[%s2075_s1] sm:$0xff]  ;;  %v291_v10 = vld [vmem:[%s2076_s2 + $0x10] sm:$0xff]  ;;  %v290_v12 = vld [vmem:[%s2076_s2 + $0x8] sm:$0xff]  ;;  %vm1143_vm2 = vcmask 1042434   ;;  %vm1145_vm3 = vcmask 1041408   ;;  %vm1147_vm4 = vcmask 1044484  }
  0x19   : > { %332 = vperm.xlu0 %1324, %v288_v1   ;;  %322 = vperm.xlu2 %1328, %v286_v3   ;;  %v289_v11 = vld [vmem:[%s2076_s2] sm:$0xff]  ;;  %v300_v15 = vld [vmem:[%s2078_s4 + $0x8] sm:$0xff]  ;;  %v301_v16 = vld [vmem:[%s2078_s4 + $0x10] sm:$0xff]  ;;  %s277_s25 = scalar_select %p276_p10, %s1551_s24, 15  ;;  %vm1149_vm5 = vcmask 1046534   ;;  %vm1151_vm6 = vcmask 1045508  }
  0x1a   : > { %v299_v13 = vld [vmem:[%s2078_s4] sm:$0xff]  ;;  %v306_v17 = vld [vmem:[%s2079_s5 + $0x10] sm:$0xff]  ;;  %v302_v18 = vld [vmem:[%s2078_s4 + $0x18] sm:$0xff]  ;;  %vm1153_vm7 = vcmask 1043456   ;;  %s1353_s21 = scalar_lea.hbm %s2081_s7, 16 }
  0x1b   : > { %v304_v14 = vld [vmem:[%s2079_s5] sm:$0xff]  ;;  %v305_v19 = vld [vmem:[%s2079_s5 + $0x8] sm:$0xff]  ;;  %v307_v22 = vld [vmem:[%s2079_s5 + $0x18] sm:$0xff]  ;;  %s1238_s30 = sshll.u32 %s277_s25, 1  ;;  %s272_s25 = sand.u32 1, %s1387_s27  }
  0x1c   : > { %v309_v20 = vld [vmem:[#allocation2] sm:$0x1]  ;;  %s279_s14 = scalar_lea.vmem %s2074_s0, %s1238_s30  ;;  %s1236_s30 = sshll.u32 %s272_s25, 3 }
  0x1d   : > { %v303_v21 = vld [vmem:[%s2078_s4 + $0x20] sm:$0xff]  ;;  %v283_v26 = vld [vmem:[%s279_s14 + $0x8] sm:$0xff]  ;;  %s274_s6 = scalar_lea.vmem [#allocation3], %s1236_s30 }
  0x1e   : > { %v308_v23 = vld [vmem:[%s2079_s5 + $0x20] sm:$0xff]  ;;  %v341_v36 = vperm.slane %v283_v26, 0  ;;  %v425_v37 = vperm.slane %v283_v26, 1  ;;  %v342_v38 = vperm.slane %v283_v26, 2  ;;  %v426_v39 = vperm.slane %v283_v26, 3  ;;  %s1170_s15 = sshll.u32 %s274_s6, 4  ;;  %s1171_s15 = int_to_ptr.vmem [resolvable:$true] %s1170_s15 }
  0x1f   : > { %v282_v25 = vld [vmem:[%s279_s14] sm:$0xff]  ;;  %v343_v40 = vperm.slane %v283_v26, 4  ;;  %v427_v41 = vperm.slane %v283_v26, 5  ;;  %v344_v42 = vperm.slane %v283_v26, 6  ;;  %v428_v43 = vperm.slane %v283_v26, 7  ;;  %s1168_s14 = scalar_lea.hbm %s2081_s7, %s1551_s24  ;;  %s1158_s24 = scalar_lea.sflag [#allocation4], %s272_s25 }
  0x20   : > { %1327 = vset.pattern.permute.xlu1 %v1398_v5  ;;  %v337_v27 = vperm.slane %v282_v25, 0  ;;  %v338_v28 = vperm.slane %v282_v25, 2  ;;  %v339_v29 = vperm.slane %v282_v25, 4  ;;  %v340_v30 = vperm.slane %v282_v25, 6  ;;  %s1172_s16 = sshll.u32 %s1168_s14, 4  ;;  %s1173_s16 = int_to_ptr.hbm [resolvable:$true] %s1172_s16 }
  0x21   : > { %1325 = vset.pattern.permute.xlu0 %v1398_v5  ;;  %1329 = vset.pattern.permute.xlu2 %v1398_v5  ;;  %v421_v32 = vperm.slane %v282_v25, 1  ;;  %v422_v33 = vperm.slane %v282_v25, 3  ;;  %v423_v34 = vperm.slane %v282_v25, 5  ;;  %v424_v35 = vperm.slane %v282_v25, 7  ;;  %s1347_s17 = sshra.s32 %s1173_s16, 4  ;;  %s1348_s17 = int_to_ptr.hbm [resolvable:$true] %s1347_s17 }
  0x22   : > { %418 = vperm.xlu0 %1325, %v288_v1   ;;  %414 = vperm.xlu1 %1327, %v287_v2   ;;  %v1558_v44 = vperm.slane %v337_v27, 0  ;;  %v1560_v45 = vperm.slane %v338_v28, 0  ;;  %v1562_v46 = vperm.slane %v339_v29, 0  ;;  %v1564_v47 = vperm.slane %v340_v30, 0  ;;  %s1349_s18 = scalar_lea.hbm %s1348_s17, 8  ;;  %p1354_p0 = scmp.lt.s32.totalorder %s1348_s17, %s2081_s7 }
  0x23   : > { %410 = vperm.xlu2 %1329, %v286_v3   ;;  %v1566_v48 = vperm.slane %v421_v32, 1  ;;  %v1568_v49 = vperm.slane %v422_v33, 1  ;;  %v1570_v50 = vperm.slane %v423_v34, 1  ;;  %v1572_v51 = vperm.slane %v424_v35, 1  ;;  %p1350_p11 = scmp.ne.s32.totalorder %s1348_s17, %s1349_s18  ;;  %p1355_p1 = scmp.lt.s32.totalorder %s1353_s21, %s1349_s18 }
  0x24   : > { %v1574_v53 = vperm.slane %v341_v36, 0  ;;  %v1576_v54 = vperm.slane %v425_v37, 1  ;;  %v1578_v55 = vperm.slane %v342_v38, 0  ;;  %v1580_v56 = vperm.slane %v426_v39, 1 }
  0x25   : > { %v1582_v58 = vperm.slane %v343_v40, 0  ;;  %v1584_v59 = vperm.slane %v427_v41, 1  ;;  %v1586_v60 = vperm.slane %v344_v42, 0  ;;  %v1588_v61 = vperm.slane %v428_v43, 1  ;;  %p1351_p12 = pnand %p1350_p11, %p1479_p5  ;;  %p1356_p2 = por %p1355_p1, %p1354_p0 }
  0x26   : > { %2087 = vst [vmem:[#allocation6_spill] sm:$0xff] %v1578_v55 }
  0x27   : > { %2088 = vst [vmem:[#allocation7_spill] sm:$0xff] %v1582_v58  ;;  %p1352_p13 = pneg %p1351_p12 }
  0x28   : > { %2089 = vst [vmem:[#allocation8_spill] sm:$0xff] %v1586_v60 }
  0x29   : > { %p1357_p3 = pnand %p1356_p2, %p1352_p13 }
  0x2a   : > { %1330 = vset.pattern.permute.xlu1 %v1397_v4  ;;  %406 = vperm.xlu0 %1325, %v285_v6  }
  0x2b   : > { %1331 = vset.pattern.permute.xlu2 %v1397_v4  ;;  %547 = vperm.xlu1 %1330, %v293_v7  }
  0x2c   : > { %317 = vperm.xlu2 %1331, %v285_v6  }
  0x32   : > { %402 = vperm.xlu0 %1325, %v284_v8  }
  0x33   : > { %542 = vperm.xlu1 %1330, %v292_v9  }
  0x34   : > { %312 = vperm.xlu2 %1331, %v284_v8  }
  0x3a   : > { %1332 = vset.pattern.permute.xlu0 %v1397_v4 }
  0x3b   : > { %537 = vperm.xlu1 %1330, %v291_v10   ;;  %527 = vperm.xlu0 %1332, %v289_v11  }
  0x3c   : > { %532 = vperm.xlu2 %1331, %v290_v12  }
  0x43   : > { %632 = vperm.xlu1 %1330, %v299_v13   ;;  %969 = vperm.xlu0 %1332, %v304_v14  }
  0x44   : > { %637 = vperm.xlu2 %1331, %v300_v15  }
  0x4b   : > { %642 = vperm.xlu1 %1330, %v301_v16   ;;  %979 = vperm.xlu0 %1332, %v306_v17  }
  0x4c   : > { %647 = vperm.xlu2 %1331, %v302_v18  }
  0x53   : > { %974 = vperm.xlu1 %1330, %v305_v19   ;;  %1114 = vperm.xlu0 %1332, %v309_v20  }
  0x54   : > { %652 = vperm.xlu2 %1331, %v303_v21  }
  0x5b   : > { %984 = vperm.xlu1 %1330, %v307_v22  }
  0x5c   : > { %989 = vperm.xlu2 %1331, %v308_v23  }
  0x73   : > { %v323_v24 = vpop.permute.xlu2 %322 }
  0x74   : > { %v377_v62 = vmul.f32 %v1558_v44, %v323_v24  ;;  %v378_v63 = vmul.f32 %v1560_v45, %v323_v24  ;;  %v379_v0 = vmul.f32 %v1562_v46, %v323_v24  ;;  %v380_v1 = vmul.f32 %v1564_v47, %v323_v24 }
  0x75   : > { %v381_v6 = vmul.f32 %v1574_v53, %v323_v24  ;;  %v382_v8 = vmul.f32 %v1578_v55, %v323_v24  ;;  %v383_v11 = vmul.f32 %v1582_v58, %v323_v24  ;;  %v384_v13 = vmul.f32 %v1586_v60, %v323_v24 }
  0x7d   : > { %v411_v31 = vpop.permute.xlu2 %410 }
  0x7e   : > { %v461_v2 = vmul.f32 %v1566_v48, %v411_v31  ;;  %v462_v3 = vmul.f32 %v1568_v49, %v411_v31  ;;  %v463_v4 = vmul.f32 %v1570_v50, %v411_v31  ;;  %v464_v5 = vmul.f32 %v1572_v51, %v411_v31 }
  0x7f   : > { %v465_v7 = vmul.f32 %v1576_v54, %v411_v31  ;;  %v466_v9 = vmul.f32 %v1580_v56, %v411_v31  ;;  %v467_v12 = vmul.f32 %v1584_v59, %v411_v31  ;;  %v468_v14 = vmul.f32 %v1588_v61, %v411_v31 }
  0x80   : > { %v1606_v15 = vadd.f32 %v461_v2, %v377_v62  ;;  %v1608_v16 = vadd.f32 %v462_v3, %v378_v63  ;;  %v1610_v17 = vadd.f32 %v463_v4, %v379_v0  ;;  %v1612_v18 = vadd.f32 %v464_v5, %v380_v1 }
  0x81   : > { %v1614_v19 = vadd.f32 %v465_v7, %v381_v6  ;;  %v1616_v20 = vadd.f32 %v466_v9, %v382_v8  ;;  %v1618_v21 = vadd.f32 %v467_v12, %v383_v11  ;;  %v1620_v22 = vadd.f32 %v468_v14, %v384_v13 }
  0x83   : > { %2090 = vst [vmem:[#allocation9_spill] sm:$0xff] %v1614_v19 }
  0x84   : > { %2091 = vst [vmem:[#allocation10_spill] sm:$0xff] %v1616_v20 }
  0x85   : > { %2092 = vst [vmem:[#allocation11_spill] sm:$0xff] %v1618_v21 }
  0x86   : > { %v318_v10 = vpop.permute.xlu2 %317  ;;  %2093 = vst [vmem:[#allocation12_spill] sm:$0xff] %v1620_v22 }
  0x87   : > { %v1627_v25 = vmul.f32 %v1558_v44, %v318_v10  ;;  %v1630_v26 = vmul.f32 %v1560_v45, %v318_v10  ;;  %v1633_v27 = vmul.f32 %v1562_v46, %v318_v10  ;;  %v1636_v28 = vmul.f32 %v1564_v47, %v318_v10 }
  0x88   : > { %v1697_v7 = vmul.f32 %v1574_v53, %v318_v10 }
  0x8a   : > { %v328_v52 = vpop.permute.xlu1 %327 }
  0x8b   : > { %v333_v57 = vpop.permute.xlu0 %332  ;;  %v385_v29 = vmul.f32 %v1558_v44, %v328_v52  ;;  %v386_v30 = vmul.f32 %v1560_v45, %v328_v52  ;;  %v387_v31 = vmul.f32 %v1562_v46, %v328_v52  ;;  %v388_v32 = vmul.f32 %v1564_v47, %v328_v52 }
  0x8c   : > { %v393_v33 = vmul.f32 %v1558_v44, %v333_v57  ;;  %v394_v34 = vmul.f32 %v1560_v45, %v333_v57  ;;  %v395_v35 = vmul.f32 %v1562_v46, %v333_v57  ;;  %v396_v36 = vmul.f32 %v1564_v47, %v333_v57 }
  0x8d   : > { %v397_v37 = vmul.f32 %v1574_v53, %v333_v57  ;;  %v1648_v38 = vmul.f32 %v1578_v55, %v333_v57  ;;  %v1651_v39 = vmul.f32 %v1582_v58, %v333_v57  ;;  %v1654_v40 = vmul.f32 %v1586_v60, %v333_v57 }
  0x8e   : > { %v1664_v63 = vpop.permute.xlu2 %312  ;;  %v1667_v0 = vmul.f32 %v1574_v53, %v328_v52  ;;  %v1670_v57 = vmul.f32 %v1578_v55, %v328_v52  ;;  %v1673_v1 = vmul.f32 %v1582_v58, %v328_v52  ;;  %v1676_v2 = vmul.f32 %v1586_v60, %v328_v52 }
  0x8f   : > { %v1680_v3 = vmul.f32 %v1558_v44, %v1664_v63  ;;  %v1684_v4 = vmul.f32 %v1560_v45, %v1664_v63  ;;  %v1688_v5 = vmul.f32 %v1562_v46, %v1664_v63  ;;  %v1692_v6 = vmul.f32 %v1564_v47, %v1664_v63 }
  0x90   : > { %v1700_v44 = vmul.f32 %v1578_v55, %v318_v10  ;;  %v1703_v45 = vmul.f32 %v1582_v58, %v318_v10  ;;  %v1716_v58 = vmul.f32 %v1586_v60, %v318_v10 }
  0x92   : > { %2094 = vst [vmem:[#allocation13_spill] sm:$0xff] %v1716_v58 }
  0x94   : > { %v1622_v23 = vpop.permute.xlu0 %418  ;;  %v1624_v24 = vpop.permute.xlu1 %414 }
  0x95   : > { %v477_v41 = vmul.f32 %v1566_v48, %v1622_v23  ;;  %v478_v42 = vmul.f32 %v1568_v49, %v1622_v23  ;;  %v479_v43 = vmul.f32 %v1570_v50, %v1622_v23  ;;  %v480_v62 = vmul.f32 %v1572_v51, %v1622_v23 }
  0x96   : > { %v469_v52 = vmul.f32 %v1566_v48, %v1624_v24  ;;  %v470_v13 = vmul.f32 %v1568_v49, %v1624_v24  ;;  %v471_v14 = vmul.f32 %v1570_v50, %v1624_v24  ;;  %v472_v22 = vmul.f32 %v1572_v51, %v1624_v24 }
  0x97   : > { %v517_v46 = vadd.f32 %v477_v41, %v393_v33  ;;  %v518_v9 = vadd.f32 %v478_v42, %v394_v34  ;;  %v519_v11 = vadd.f32 %v479_v43, %v395_v35  ;;  %v520_v12 = vadd.f32 %v480_v62, %v396_v36 }
  0x98   : > { %v509_v36 = vadd.f32 %v469_v52, %v385_v29  ;;  %v481_v43 = vmul.f32 %v1576_v54, %v1622_v23  ;;  %v482_v29 = vmul.f32 %v1580_v56, %v1622_v23  ;;  %v483_v52 = vmul.f32 %v1584_v59, %v1622_v23 }
  0x99   : > { %v511_v20 = vadd.f32 %v471_v14, %v387_v31  ;;  %v473_v19 = vmul.f32 %v1576_v54, %v1624_v24 }
  0x9a   : > { %v521_v58 = vadd.f32 %v481_v43, %v397_v37  ;;  %v523_v31 = vadd.f32 %v483_v52, %v1651_v39 }
  0x9c   : > { %v1705_v8 = vpop.permute.xlu0 %406 }
  0x9d   : > { %v1707_v47 = vpop.permute.xlu1 %547  ;;  %v453_v41 = vmul.f32 %v1566_v48, %v1705_v8  ;;  %v454_v42 = vmul.f32 %v1568_v49, %v1705_v8 }
  0x9e   : > { %v582_v21 = vadd.f32 %v1707_v47, %v517_v46  ;;  %v583_v33 = vadd.f32 %v1707_v47, %v518_v9  ;;  %v584_v34 = vadd.f32 %v1707_v47, %v519_v11  ;;  %v585_v35 = vadd.f32 %v1707_v47, %v520_v12 }
  0x9f   : > { %v455_v9 = vmul.f32 %v1570_v50, %v1705_v8  ;;  %v456_v11 = vmul.f32 %v1572_v51, %v1705_v8  ;;  %v510_v12 = vadd.f32 %v470_v13, %v386_v30  ;;  %v474_v30 = vmul.f32 %v1580_v56, %v1624_v24 }
  0xa0   : > { %v622_v10 = vmax.f32 %v582_v21, 0.0  ;;  %v623_v62 = vmax.f32 %v583_v33, 0.0  ;;  %v624_v60 = vmax.f32 %v584_v34, 0.0  ;;  %v625_v46 = vmax.f32 %v585_v35, 0.0 }
  0xa1   : > { %v512_v21 = vadd.f32 %v472_v22, %v388_v32  ;;  %v493_v33 = vadd.f32 %v453_v41, %v1627_v25  ;;  %v494_v34 = vadd.f32 %v454_v42, %v1630_v26  ;;  %v484_v35 = vmul.f32 %v1588_v61, %v1622_v23  ;;  %v1754_v32 = vpop.permute.xlu2 %532 }
  0xa2   : > { %682 = vmatpush.msra.mxu0 %v622_v10  ;;  %714 = vmatpush.msra.mxu1 %v623_v62  ;;  %v495_v25 = vadd.f32 %v455_v9, %v1633_v27  ;;  %v496_v26 = vadd.f32 %v456_v11, %v1636_v28  ;;  %v522_v23 = vadd.f32 %v482_v29, %v1648_v38 }
  0xa3   : > { %746 = vmatpush.msra.mxu2 %v624_v60  ;;  %778 = vmatpush.msra.mxu3 %v625_v46  ;;  %v475_v60 = vmul.f32 %v1584_v59, %v1624_v24  ;;  %v558_v42 = vadd.f32 %v1754_v32, %v493_v33  ;;  %v559_v27 = vadd.f32 %v1754_v32, %v494_v34 }
  0xa4   : > { %v1740_v55 = vpop.permute.xlu0 %402  ;;  %v524_v28 = vadd.f32 %v484_v35, %v1654_v40  ;;  %v476_v38 = vmul.f32 %v1588_v61, %v1624_v24  ;;  %v561_v46 = vadd.f32 %v1754_v32, %v496_v26  ;;  %v513_v40 = vadd.f32 %v473_v19, %v1667_v0 }
  0xa5   : > { %v1748_v22 = vpop.permute.xlu1 %542  ;;  %v446_v9 = vmul.f32 %v1568_v49, %v1740_v55  ;;  %v514_v24 = vadd.f32 %v474_v30, %v1670_v57  ;;  %v515_v11 = vadd.f32 %v475_v60, %v1673_v1  ;;  %v447_v29 = vmul.f32 %v1570_v50, %v1740_v55 }
  0xa6   : > { %v574_v37 = vadd.f32 %v1748_v22, %v509_v36  ;;  %v575_v13 = vadd.f32 %v1748_v22, %v510_v12  ;;  %v576_v14 = vadd.f32 %v1748_v22, %v511_v20  ;;  %v577_v41 = vadd.f32 %v1748_v22, %v512_v21 }
  0xa7   : > { %v560_v36 = vadd.f32 %v1754_v32, %v495_v25  ;;  %v445_v20 = vmul.f32 %v1566_v48, %v1740_v55  ;;  %v448_v52 = vmul.f32 %v1572_v51, %v1740_v55  ;;  %v1779_v48 = vadd.f32 %v1707_v47, %v521_v58 }
  0xa8   : > { %v614_v39 = vmax.f32 %v574_v37, 0.0  ;;  %v615_v43 = vmax.f32 %v575_v13, 0.0  ;;  %v616_v10 = vmax.f32 %v576_v14, 0.0  ;;  %v617_v62 = vmax.f32 %v577_v41, 0.0 }
  0xa9   : > { %v598_v49 = vmax.f32 %v558_v42, 0.0  ;;  %v599_v12 = vmax.f32 %v559_v27, 0.0  ;;  %v1782_v21 = vadd.f32 %v1707_v47, %v522_v23  ;;  %v1785_v19 = vadd.f32 %v1707_v47, %v523_v31 }
  0xaa   : > { %683 = vmatpush.msra.mxu0 %v614_v39  ;;  %715 = vmatpush.msra.mxu1 %v615_v43  ;;  %v600_v1 = vmax.f32 %v560_v36, 0.0  ;;  %v601_v50 = vmax.f32 %v561_v46, 0.0  ;;  %v485_v33 = vadd.f32 %v445_v20, %v1680_v3  ;;  %v486_v51 = vadd.f32 %v446_v9, %v1684_v4 }
  0xab   : > { %747 = vmatpush.msra.mxu2 %v616_v10  ;;  %779 = vmatpush.msra.mxu3 %v617_v62  ;;  %v487_v3 = vadd.f32 %v447_v29, %v1688_v5  ;;  %v488_v4 = vadd.f32 %v448_v52, %v1692_v6  ;;  %v626_v5 = vmax.f32 %v1779_v48, 0.0  ;;  %v589_v6 = vadd.f32 %v1707_v47, %v524_v28  ;;  %v1826_v62 = vld [vmem:[%s2077_s3] sm:$0xff]  ;;  %v2097_v29 = vld [vmem:[#allocation6_spill] sm:$0xff] }
  0xac   : > { %v516_v13 = vadd.f32 %v476_v38, %v1676_v2  ;;  %v459_v14 = vmul.f32 %v1584_v59, %v1705_v8  ;;  %v627_v41 = vmax.f32 %v1782_v21, 0.0  ;;  %v578_v42 = vadd.f32 %v1748_v22, %v513_v40  ;;  %v2099_v48 = vld [vmem:[#allocation11_spill] sm:$0xff] }
  0xad   : > { %v1787_v0 = vpop.permute.xlu1 %537  ;;  %v1789_v57 = vpop.permute.xlu0 %527  ;;  %v579_v27 = vadd.f32 %v1748_v22, %v514_v24  ;;  %v460_v39 = vmul.f32 %v1588_v61, %v1705_v8  ;;  %v580_v2 = vadd.f32 %v1748_v22, %v515_v11  ;;  %v628_v46 = vmax.f32 %v1785_v19, 0.0  ;;  %v2095_v24 = vld [vmem:[#allocation9_spill] sm:$0xff]  ;;  %v2100_v19 = vld [vmem:[#allocation12_spill] sm:$0xff] }
  0xae   : > { %v566_v58 = vadd.f32 %v1787_v0, %v1606_v15  ;;  %v567_v34 = vadd.f32 %v1787_v0, %v1608_v16  ;;  %v568_v35 = vadd.f32 %v1787_v0, %v1610_v17  ;;  %v569_v30 = vadd.f32 %v1787_v0, %v1612_v18  ;;  %v2096_v11 = vld [vmem:[#allocation13_spill] sm:$0xff] }
  0xaf   : > { %v550_v60 = vadd.f32 %v1789_v57, %v485_v33  ;;  %v551_v25 = vadd.f32 %v1789_v57, %v486_v51  ;;  %v552_v16 = vadd.f32 %v1789_v57, %v487_v3  ;;  %v553_v37 = vadd.f32 %v1789_v57, %v488_v4 }
  0xb0   : > { %v606_v26 = vmax.f32 %v566_v58, 0.0  ;;  %v607_v23 = vmax.f32 %v567_v34, 0.0  ;;  %v608_v15 = vmax.f32 %v568_v35, 0.0  ;;  %v609_v31 = vmax.f32 %v569_v30, 0.0  ;;  %v2101_v30 = vld [vmem:[#allocation7_spill] sm:$0xff] }
  0xb1   : > { %v457_v17 = vmul.f32 %v1576_v54, %v1705_v8  ;;  %v458_v18 = vmul.f32 %v1580_v56, %v1705_v8  ;;  %v590_v43 = vmax.f32 %v550_v60, 0.0  ;;  %v591_v47 = vmax.f32 %v551_v25, 0.0  ;;  %v2102_v60 = vld [vmem:[#allocation8_spill] sm:$0xff] }
  0xb2   : > { %684 = vmatpush.msra.mxu0 %v606_v26  ;;  %716 = vmatpush.msra.mxu1 %v607_v23  ;;  %v581_v28 = vadd.f32 %v1748_v22, %v516_v13  ;;  %v592_v38 = vmax.f32 %v552_v16, 0.0  ;;  %v593_v10 = vmax.f32 %v553_v37, 0.0  ;;  %v499_v20 = vadd.f32 %v459_v14, %v1703_v45  ;;  %v2098_v45 = vld [vmem:[#allocation10_spill] sm:$0xff] }
  0xb3   : > { %748 = vmatpush.msra.mxu2 %v608_v15  ;;  %780 = vmatpush.msra.mxu3 %v609_v31  ;;  %v497_v36 = vadd.f32 %v457_v17, %v1697_v7  ;;  %v498_v8 = vadd.f32 %v458_v18, %v1700_v44  ;;  %v365_v22 = vmul.f32 %v1574_v53, %v1664_v63  ;;  %v629_v40 = vmax.f32 %v589_v6, 0.0 }
  0xb4   : > { %685 = vmatpush.msra.mxu0 %v598_v49  ;;  %717 = vmatpush.msra.mxu1 %v599_v12  ;;  %v449_v9 = vmul.f32 %v1576_v54, %v1740_v55  ;;  %v570_v7 = vadd.f32 %v1787_v0, %v2095_v24  ;;  %v500_v44 = vadd.f32 %v460_v39, %v2096_v11  ;;  %v618_v53 = vmax.f32 %v578_v42, 0.0  ;;  %v297_v39 = vld [vmem:[%s2077_s3 + $0x18] sm:$0xff] }
  0xb5   : > { %749 = vmatpush.msra.mxu2 %v600_v1  ;;  %781 = vmatpush.msra.mxu3 %v601_v50  ;;  %v366_v52 = vmul.f32 %v2097_v29, %v1664_v63  ;;  %v571_v54 = vadd.f32 %v1787_v0, %v2098_v45  ;;  %v572_v49 = vadd.f32 %v1787_v0, %v2099_v48  ;;  %v619_v21 = vmax.f32 %v579_v27, 0.0 }
  0xb6   : > { %686 = vmatpush.msra.mxu0 %v590_v43  ;;  %718 = vmatpush.msra.mxu1 %v591_v47  ;;  %v450_v12 = vmul.f32 %v1580_v56, %v1740_v55  ;;  %v573_v1 = vadd.f32 %v1787_v0, %v2100_v19  ;;  %v451_v50 = vmul.f32 %v1584_v59, %v1740_v55  ;;  %v620_v51 = vmax.f32 %v580_v2, 0.0  ;;  %v298_v43 = vld [vmem:[%s2077_s3 + $0x20] sm:$0xff] }
  0xb7   : > { %750 = vmatpush.msra.mxu2 %v592_v38  ;;  %782 = vmatpush.msra.mxu3 %v593_v10  ;;  %v452_v33 = vmul.f32 %v1588_v61, %v1740_v55  ;;  %v562_v56 = vadd.f32 %v1754_v32, %v497_v36  ;;  %v563_v58 = vadd.f32 %v1754_v32, %v498_v8  ;;  %v621_v35 = vmax.f32 %v581_v28, 0.0  ;;  %v1925_v28 = vpop.permute.xlu1 %632  ;;  %v1927_v38 = vpop.permute.xlu2 %637 }
  0xb8   : > { %1239 = vmatmul.msk.f32.vlgmr.msra.gmra.mxu0 %vm655_vm0, %v1826_v62  ;;  %1244 = vmatmul.msk.f32.vlgmr.msra.gmra.mxu1 %vm655_vm0, %v1826_v62  ;;  %v564_v34 = vadd.f32 %v1754_v32, %v499_v20  ;;  %v565_v0 = vadd.f32 %v1754_v32, %v500_v44  ;;  %v367_v59 = vmul.f32 %v2101_v30, %v1664_v63  ;;  %v610_v61 = vmax.f32 %v570_v7, 0.0  ;;  %v1933_v7 = vpop.permute.xlu0 %969 }
  0xb9   : > { %1249 = vmatmul.msk.f32.vlgmr.msra.gmra.mxu2 %vm655_vm0, %v1826_v62  ;;  %1254 = vmatmul.msk.f32.vlgmr.msra.gmra.mxu3 %vm655_vm0, %v1826_v62  ;;  %v368_v55 = vmul.f32 %v2102_v60, %v1664_v63  ;;  %v611_v25 = vmax.f32 %v571_v54, 0.0  ;;  %v489_v3 = vadd.f32 %v449_v9, %v365_v22  ;;  %v490_v4 = vadd.f32 %v450_v12, %v366_v52 }
  0xba   : > { %810 = vmatpush.msrb.mxu0 %v626_v5  ;;  %842 = vmatpush.msrb.mxu1 %v627_v41  ;;  %v612_v26 = vmax.f32 %v572_v49, 0.0  ;;  %v613_v23 = vmax.f32 %v573_v1, 0.0  ;;  %v491_v15 = vadd.f32 %v451_v50, %v367_v59  ;;  %v602_v32 = vmax.f32 %v562_v56, 0.0  ;;  %v295_v5 = vld [vmem:[%s2077_s3 + $0x8] sm:$0xff] }
  0xbb   : > { %874 = vmatpush.msrb.mxu2 %v628_v46  ;;  %906 = vmatpush.msrb.mxu3 %v629_v40  ;;  %v492_v31 = vadd.f32 %v452_v33, %v368_v55  ;;  %v603_v16 = vmax.f32 %v563_v58, 0.0  ;;  %v554_v37 = vadd.f32 %v1789_v57, %v489_v3  ;;  %v555_v63 = vadd.f32 %v1789_v57, %v490_v4 }
  0xbc   : > { %811 = vmatpush.msrb.mxu0 %v618_v53  ;;  %843 = vmatpush.msrb.mxu1 %v619_v21  ;;  %v604_v17 = vmax.f32 %v564_v34, 0.0  ;;  %v605_v18 = vmax.f32 %v565_v0, 0.0  ;;  %v556_v6 = vadd.f32 %v1789_v57, %v491_v15 }
  0xbd   : > { %875 = vmatpush.msrb.mxu2 %v620_v51  ;;  %907 = vmatpush.msrb.mxu3 %v621_v35  ;;  %v557_v13 = vadd.f32 %v1789_v57, %v492_v31  ;;  %v594_v14 = vmax.f32 %v554_v37, 0.0  ;;  %v595_v41 = vmax.f32 %v555_v63, 0.0  ;;  %v296_v57 = vld [vmem:[%s2077_s3 + $0x10] sm:$0xff] }
  0xbe   : > { %812 = vmatpush.msrb.mxu0 %v610_v61  ;;  %844 = vmatpush.msrb.mxu1 %v611_v25  ;;  %v596_v42 = vmax.f32 %v556_v6, 0.0 }
  0xbf   : > { %876 = vmatpush.msrb.mxu2 %v612_v26  ;;  %908 = vmatpush.msrb.mxu3 %v613_v23  ;;  %v597_v27 = vmax.f32 %v557_v13, 0.0  ;;  %v1929_v46 = vpop.permute.xlu1 %642  ;;  %v1931_v20 = vpop.permute.xlu2 %647 }
  0xc0   : > { %813 = vmatpush.msrb.mxu0 %v602_v32  ;;  %845 = vmatpush.msrb.mxu1 %v603_v16  ;;  %v1955_v23 = vpop.permute.xlu0 %979 }
  0xc1   : > { %877 = vmatpush.msrb.mxu2 %v604_v17  ;;  %909 = vmatpush.msrb.mxu3 %v605_v18 }
  0xc2   : > { %1240 = vmatmul.msk.f32.gmra.mxu0 %vm655_vm0, %v295_v5  ;;  %1245 = vmatmul.msk.f32.gmra.mxu1 %vm655_vm0, %v295_v5 }
  0xc3   : > { %1250 = vmatmul.msk.f32.gmra.mxu2 %vm655_vm0, %v295_v5  ;;  %1255 = vmatmul.msk.f32.gmra.mxu3 %vm655_vm0, %v295_v5 }
  0xc4   : > { %814 = vmatpush.msrb.mxu0 %v594_v14  ;;  %846 = vmatpush.msrb.mxu1 %v595_v41 }
  0xc5   : > { %878 = vmatpush.msrb.mxu2 %v596_v42  ;;  %910 = vmatpush.msrb.mxu3 %v597_v27 }
  0xc7   : > { %v1935_v11 = vpop.permute.xlu1 %974  ;;  %v1945_v58 = vpop.permute.xlu2 %652 }
  0xca   : > { %1241 = vmatmul.msk.f32.gmra.mxu0 %vm655_vm0, %v296_v57  ;;  %1246 = vmatmul.msk.f32.gmra.mxu1 %vm655_vm0, %v296_v57 }
  0xcb   : > { %1251 = vmatmul.msk.f32.gmra.mxu2 %vm655_vm0, %v296_v57  ;;  %1256 = vmatmul.msk.f32.gmra.mxu3 %vm655_vm0, %v296_v57 }
  0xcf   : > { %v1957_v15 = vpop.permute.xlu1 %984 }
  0xd2   : > { %1242 = vmatmul.msk.f32.gmra.mxu0 %vm655_vm0, %v297_v39  ;;  %1247 = vmatmul.msk.f32.gmra.mxu1 %vm655_vm0, %v297_v39 }
  0xd3   : > { %1252 = vmatmul.msk.f32.gmra.mxu2 %vm655_vm0, %v297_v39  ;;  %1257 = vmatmul.msk.f32.gmra.mxu3 %vm655_vm0, %v297_v39 }
  0xda   : > { %1243 = vmatmul.msk.f32.gmra.mxu0 %vm655_vm0, %v298_v43  ;;  %1248 = vmatmul.msk.f32.gmra.mxu1 %vm655_vm0, %v298_v43 }
  0xdb   : > { %1253 = vmatmul.msk.f32.gmra.mxu2 %vm655_vm0, %v298_v43  ;;  %1258 = vmatmul.msk.f32.gmra.mxu3 %vm655_vm0, %v298_v43 }
  0xe2   : > { %1259 = vmatmul.msk.f32.vlgmr.msrb.gmra.mxu0 %vm655_vm0, %v1826_v62  ;;  %1264 = vmatmul.msk.f32.vlgmr.msrb.gmra.mxu1 %vm655_vm0, %v1826_v62 }
  0xe3   : > { %1269 = vmatmul.msk.f32.vlgmr.msrb.gmra.mxu2 %vm655_vm0, %v1826_v62  ;;  %1274 = vmatmul.msk.f32.vlgmr.msrb.gmra.mxu3 %vm655_vm0, %v1826_v62 }
  0xea   : > { %1260 = vmatmul.msk.f32.gmra.mxu0 %vm655_vm0, %v295_v5  ;;  %1265 = vmatmul.msk.f32.gmra.mxu1 %vm655_vm0, %v295_v5 }
  0xeb   : > { %1270 = vmatmul.msk.f32.gmra.mxu2 %vm655_vm0, %v295_v5  ;;  %1275 = vmatmul.msk.f32.gmra.mxu3 %vm655_vm0, %v295_v5 }
  0xf2   : > { %1261 = vmatmul.msk.f32.gmra.mxu0 %vm655_vm0, %v296_v57  ;;  %1266 = vmatmul.msk.f32.gmra.mxu1 %vm655_vm0, %v296_v57 }
  0xf3   : > { %1271 = vmatmul.msk.f32.gmra.mxu2 %vm655_vm0, %v296_v57  ;;  %1276 = vmatmul.msk.f32.gmra.mxu3 %vm655_vm0, %v296_v57 }
  0xfa   : > { %1262 = vmatmul.msk.f32.gmra.mxu0 %vm655_vm0, %v297_v39  ;;  %1267 = vmatmul.msk.f32.gmra.mxu1 %vm655_vm0, %v297_v39 }
  0xfb   : > { %1272 = vmatmul.msk.f32.gmra.mxu2 %vm655_vm0, %v297_v39  ;;  %1277 = vmatmul.msk.f32.gmra.mxu3 %vm655_vm0, %v297_v39 }
 0x102   : > { %1263 = vmatmul.msk.f32.gmra.mxu0 %vm655_vm0, %v298_v43  ;;  %1268 = vmatmul.msk.f32.gmra.mxu1 %vm655_vm0, %v298_v43 }
 0x103   : > { %1273 = vmatmul.msk.f32.gmra.mxu2 %vm655_vm0, %v298_v43  ;;  %1278 = vmatmul.msk.f32.gmra.mxu3 %vm655_vm0, %v298_v43 }
 0x135   : > { %v688_v47 = vpop.f32.mrf.mxu0  ;;  %v720_v2 = vpop.f32.mrf.mxu1 }
 0x136   : > { %v689_v52 = vadd.f32 %v688_v47, %v1925_v28  ;;  %v721_v53 = vadd.f32 %v720_v2, %v1925_v28 }
 0x138   : > { %v927_v50 = vmax.f32 %v689_v52, 0.0  ;;  %v928_v33 = vmax.f32 %v721_v53, 0.0 }
 0x13a   : > { %v992_v25 = vmul.f32 %v1933_v7, %v927_v50  ;;  %v993_v3 = vmul.f32 %v1933_v7, %v928_v33 }
 0x13c   : > { %v752_v10 = vpop.f32.mrf.mxu2  ;;  %v784_v62 = vpop.f32.mrf.mxu3 }
 0x13d   : > { %v753_v0 = vadd.f32 %v752_v10, %v1925_v28  ;;  %v785_v30 = vadd.f32 %v784_v62, %v1925_v28 }
 0x13f   : > { %v691_v36 = vpop.f32.mrf.mxu0  ;;  %v723_v8 = vpop.f32.mrf.mxu1  ;;  %v929_v63 = vmax.f32 %v753_v0, 0.0  ;;  %v930_v17 = vmax.f32 %v785_v30, 0.0 }
 0x140   : > { %v692_v44 = vadd.f32 %v691_v36, %v1927_v38  ;;  %v724_v29 = vadd.f32 %v723_v8, %v1927_v38 }
 0x141   : > { %v994_v52 = vmul.f32 %v1933_v7, %v929_v63  ;;  %v995_v53 = vmul.f32 %v1933_v7, %v930_v17 }
 0x142   : > { %v935_v12 = vmax.f32 %v692_v44, 0.0  ;;  %v936_v21 = vmax.f32 %v724_v29, 0.0  ;;  %v1971_v29 = vpop.permute.xlu2 %989 }
 0x144   : > { %v1000_v55 = vmul.f32 %v1935_v11, %v935_v12  ;;  %v1001_v61 = vmul.f32 %v1935_v11, %v936_v21 }
 0x146   : > { %v755_v22 = vpop.f32.mrf.mxu2  ;;  %v787_v9 = vpop.f32.mrf.mxu3  ;;  %v1032_v14 = vadd.f32 %v1000_v55, %v992_v25  ;;  %v1042_v41 = vadd.f32 %v1001_v61, %v993_v3 }
 0x147   : > { %v694_v40 = vpop.f32.mrf.mxu0  ;;  %v726_v24 = vpop.f32.mrf.mxu1  ;;  %v756_v34 = vadd.f32 %v755_v22, %v1927_v38  ;;  %v788_v35 = vadd.f32 %v787_v9, %v1927_v38 }
 0x148   : > { %v695_v45 = vadd.f32 %v694_v40, %v1929_v46  ;;  %v727_v54 = vadd.f32 %v726_v24, %v1929_v46 }
 0x149   : > { %v937_v31 = vmax.f32 %v756_v34, 0.0  ;;  %v938_v32 = vmax.f32 %v788_v35, 0.0 }
 0x14a   : > { %v943_v59 = vmax.f32 %v695_v45, 0.0  ;;  %v944_v60 = vmax.f32 %v727_v54, 0.0 }
 0x14b   : > { %v1002_v62 = vmul.f32 %v1935_v11, %v937_v31  ;;  %v1003_v36 = vmul.f32 %v1935_v11, %v938_v32 }
 0x14c   : > { %v1008_v18 = vmul.f32 %v1955_v23, %v943_v59  ;;  %v1009_v5 = vmul.f32 %v1955_v23, %v944_v60 }
 0x14d   : > { %v1052_v50 = vadd.f32 %v1002_v62, %v994_v52  ;;  %v1062_v33 = vadd.f32 %v1003_v36, %v995_v53 }
 0x14e   : > { %v758_v48 = vpop.f32.mrf.mxu2  ;;  %v790_v49 = vpop.f32.mrf.mxu3  ;;  %v1033_v9 = vadd.f32 %v1032_v14, %v1008_v18  ;;  %v1043_v40 = vadd.f32 %v1042_v41, %v1009_v5 }
 0x14f   : > { %v697_v19 = vpop.f32.mrf.mxu0  ;;  %v729_v1 = vpop.f32.mrf.mxu1  ;;  %v759_v16 = vadd.f32 %v758_v48, %v1929_v46  ;;  %v791_v37 = vadd.f32 %v790_v49, %v1929_v46 }
 0x150   : > { %v698_v51 = vadd.f32 %v697_v19, %v1931_v20  ;;  %v730_v56 = vadd.f32 %v729_v1, %v1931_v20  ;;  %v1115_v14 = vpop.permute.xlu0 %1114 }
 0x151   : > { %v945_v8 = vmax.f32 %v759_v16, 0.0  ;;  %v946_v22 = vmax.f32 %v791_v37, 0.0 }
 0x152   : > { %v951_v4 = vmax.f32 %v698_v51, 0.0  ;;  %v952_v26 = vmax.f32 %v730_v56, 0.0 }
 0x153   : > { %v1010_v19 = vmul.f32 %v1955_v23, %v945_v8  ;;  %v1011_v1 = vmul.f32 %v1955_v23, %v946_v22 }
 0x154   : > { %v1016_v43 = vmul.f32 %v1957_v15, %v951_v4  ;;  %v1017_v47 = vmul.f32 %v1957_v15, %v952_v26 }
 0x155   : > { %v1053_v4 = vadd.f32 %v1052_v50, %v1010_v19  ;;  %v1063_v26 = vadd.f32 %v1062_v33, %v1011_v1 }
 0x156   : > { %v761_v6 = vpop.f32.mrf.mxu2  ;;  %v793_v13 = vpop.f32.mrf.mxu3  ;;  %v1034_v48 = vadd.f32 %v1033_v9, %v1016_v43  ;;  %v1044_v49 = vadd.f32 %v1043_v40, %v1017_v47  ;;  %v1985_v40 = vperm.slane %v1115_v14, 0 }
 0x157   : > { %v762_v42 = vadd.f32 %v761_v6, %v1931_v20  ;;  %v794_v27 = vadd.f32 %v793_v13, %v1931_v20  ;;  %v700_v57 = vpop.f32.mrf.mxu0  ;;  %v732_v39 = vpop.f32.mrf.mxu1 }
 0x158   : > { %v701_v2 = vadd.f32 %v700_v57, %v1945_v58  ;;  %v733_v10 = vadd.f32 %v732_v39, %v1945_v58 }
 0x159   : > { %v953_v45 = vmax.f32 %v762_v42, 0.0  ;;  %v954_v54 = vmax.f32 %v794_v27, 0.0 }
 0x15a   : > { %v959_v24 = vmax.f32 %v701_v2, 0.0  ;;  %v960_v44 = vmax.f32 %v733_v10, 0.0 }
 0x15b   : > { %v1018_v0 = vmul.f32 %v1957_v15, %v953_v45  ;;  %v1019_v30 = vmul.f32 %v1957_v15, %v954_v54 }
 0x15c   : > { %v1024_v12 = vmul.f32 %v1971_v29, %v959_v24  ;;  %v1025_v21 = vmul.f32 %v1971_v29, %v960_v44 }
 0x15d   : > { %v1054_v63 = vadd.f32 %v1053_v4, %v1018_v0  ;;  %v1064_v17 = vadd.f32 %v1063_v26, %v1019_v30 }
 0x15e   : > { %v1035_v51 = vadd.f32 %v1034_v48, %v1024_v12  ;;  %v1045_v56 = vadd.f32 %v1044_v49, %v1025_v21  ;;  %v764_v34 = vpop.f32.mrf.mxu2  ;;  %v796_v35 = vpop.f32.mrf.mxu3 }
 0x15f   : > { %v765_v59 = vadd.f32 %v764_v34, %v1945_v58  ;;  %v797_v60 = vadd.f32 %v796_v35, %v1945_v58  ;;  %v816_v55 = vpop.f32.mrf.mxu0  ;;  %v848_v61 = vpop.f32.mrf.mxu1 }
 0x160   : > { %v1036_v25 = vrot.slane %v1035_v51, 4  ;;  %v1046_v3 = vrot.slane %v1045_v56, 4  ;;  %v817_v0 = vadd.f32 %v816_v55, %v1925_v28 }
 0x161   : > { %v961_v31 = vmax.f32 %v765_v59, 0.0  ;;  %v962_v32 = vmax.f32 %v797_v60, 0.0 }
 0x162   : > { %v1037_v16 = vadd.f32 %v1036_v25, %v1035_v51  ;;  %v1047_v37 = vadd.f32 %v1046_v3, %v1045_v56  ;;  %v849_v3 = vadd.f32 %v848_v61, %v1925_v28 }
 0x163   : > { %v1026_v18 = vmul.f32 %v1971_v29, %v961_v31  ;;  %v1027_v5 = vmul.f32 %v1971_v29, %v962_v32 }
 0x164   : > { %v1038_v6 = vrot.slane %v1037_v16, 2  ;;  %v1048_v13 = vrot.slane %v1047_v37, 2 }
 0x165   : > { %v1055_v41 = vadd.f32 %v1054_v63, %v1026_v18  ;;  %v1065_v42 = vadd.f32 %v1064_v17, %v1027_v5 }
 0x166   : > { %v1039_v27 = vadd.f32 %v1038_v6, %v1037_v16  ;;  %v1049_v57 = vadd.f32 %v1048_v13, %v1047_v37  ;;  %v880_v39 = vpop.f32.mrf.mxu2  ;;  %v912_v43 = vpop.f32.mrf.mxu3  ;;  %v931_v37 = vmax.f32 %v817_v0, 0.0  ;;  %v932_v13 = vmax.f32 %v849_v3, 0.0 }
 0x167   : > { %v1056_v47 = vrot.slane %v1055_v41, 4  ;;  %v1066_v2 = vrot.slane %v1065_v42, 4  ;;  %v819_v10 = vpop.f32.mrf.mxu0  ;;  %v851_v62 = vpop.f32.mrf.mxu1 }
 0x168   : > { %v1040_v36 = vrot.slane %v1039_v27, 1  ;;  %v1050_v8 = vrot.slane %v1049_v57, 1  ;;  %v820_v60 = vadd.f32 %v819_v10, %v1927_v38  ;;  %v852_v25 = vadd.f32 %v851_v62, %v1927_v38 }
 0x169   : > { %v1057_v22 = vadd.f32 %v1056_v47, %v1055_v41  ;;  %v1067_v9 = vadd.f32 %v1066_v2, %v1065_v42  ;;  %v913_v47 = vadd.f32 %v912_v43, %v1925_v28 }
 0x16a   : > { %v1041_v24 = vadd.f32 %v1040_v36, %v1039_v27  ;;  %v1051_v44 = vadd.f32 %v1050_v8, %v1049_v57  ;;  %v939_v63 = vmax.f32 %v820_v60, 0.0  ;;  %v940_v17 = vmax.f32 %v852_v25, 0.0 }
 0x16b   : > { %v1058_v52 = vrot.slane %v1057_v22, 2  ;;  %v1068_v53 = vrot.slane %v1067_v9, 2  ;;  %v881_v57 = vadd.f32 %v880_v39, %v1925_v28  ;;  %v996_v8 = vmul.f32 %v1933_v7, %v931_v37 }
 0x16c   : > { %v1119_v45 = vadd.f32 %v1985_v40, %v1051_v44  ;;  %v1118_v49 = vadd.f32 %v1985_v40, %v1041_v24  ;;  %v1004_v62 = vmul.f32 %v1935_v11, %v939_v63  ;;  %v1005_v36 = vmul.f32 %v1935_v11, %v940_v17 }
 0x16d   : > { %v1059_v54 = vadd.f32 %v1058_v52, %v1057_v22  ;;  %v1069_v48 = vadd.f32 %v1068_v53, %v1067_v9  ;;  %v997_v22 = vmul.f32 %v1933_v7, %v932_v13  ;;  %v933_v53 = vmax.f32 %v881_v57, 0.0 }
 0x16e   : > { %v883_v12 = vpop.f32.mrf.mxu2  ;;  %v915_v21 = vpop.f32.mrf.mxu3  ;;  %v1134_v19 = vrot.slane %v1119_v45, 7  ;;  %v934_v28 = vmax.f32 %v913_v47, 0.0 }
 0x16f   : > { %v1060_v1 = vrot.slane %v1059_v54, 1  ;;  %v1070_v50 = vrot.slane %v1069_v48, 1  ;;  %v822_v33 = vpop.f32.mrf.mxu0  ;;  %v854_v51 = vpop.f32.mrf.mxu1  ;;  %v884_v42 = vadd.f32 %v883_v12, %v1927_v38  ;;  %v916_v27 = vadd.f32 %v915_v21, %v1927_v38 }
 0x170   : > { %v1142_v56 = vsel %vm1141_vm1, %v1118_v49, %v1134_v19  ;;  %v823_v31 = vadd.f32 %v822_v33, %v1929_v46  ;;  %v855_v32 = vadd.f32 %v854_v51, %v1929_v46  ;;  %v1072_v49 = vadd.f32 %v1004_v62, %v996_v8 }
 0x171   : > { %v1061_v34 = vadd.f32 %v1060_v1, %v1059_v54  ;;  %v1071_v35 = vadd.f32 %v1070_v50, %v1069_v48  ;;  %v941_v44 = vmax.f32 %v884_v42, 0.0  ;;  %v942_v52 = vmax.f32 %v916_v27, 0.0 }
 0x172   : > { %v947_v2 = vmax.f32 %v823_v31, 0.0  ;;  %v948_v10 = vmax.f32 %v855_v32, 0.0  ;;  %v1082_v12 = vadd.f32 %v1005_v36, %v997_v22  ;;  %v998_v3 = vmul.f32 %v1933_v7, %v933_v53 }
 0x173   : > { %v1120_v30 = vadd.f32 %v1985_v40, %v1061_v34  ;;  %v1121_v59 = vadd.f32 %v1985_v40, %v1071_v35  ;;  %v1006_v34 = vmul.f32 %v1935_v11, %v941_v44  ;;  %v1007_v35 = vmul.f32 %v1935_v11, %v942_v52 }
 0x174   : > { %v1012_v43 = vmul.f32 %v1955_v23, %v947_v2  ;;  %v1013_v45 = vmul.f32 %v1955_v23, %v948_v10 }
 0x175   : > { %v1135_v4 = vrot.slane %v1120_v30, 6  ;;  %v1136_v26 = vrot.slane %v1121_v59, 5  ;;  %v1092_v17 = vadd.f32 %v1006_v34, %v998_v3 }
 0x176   : > { %v886_v16 = vpop.f32.mrf.mxu2  ;;  %v918_v55 = vpop.f32.mrf.mxu3  ;;  %v1073_v59 = vadd.f32 %v1072_v49, %v1012_v43  ;;  %v1083_v60 = vadd.f32 %v1082_v12, %v1013_v45 }
 0x177   : > { %v825_v18 = vpop.f32.mrf.mxu0  ;;  %v857_v5 = vpop.f32.mrf.mxu1  ;;  %v1144_v6 = vsel %vm1143_vm2, %v1135_v4, %v1136_v26  ;;  %v887_v38 = vadd.f32 %v886_v16, %v1929_v46  ;;  %v919_v39 = vadd.f32 %v918_v55, %v1929_v46  ;;  %v999_v4 = vmul.f32 %v1933_v7, %v934_v28 }
 0x178   : > { %v826_v14 = vadd.f32 %v825_v18, %v1931_v20  ;;  %v858_v61 = vadd.f32 %v857_v5, %v1931_v20  ;;  %v1999_v41 = vsel %vm1145_vm3, %v1142_v56, %v1144_v6 }
 0x179   : > { %v949_v0 = vmax.f32 %v887_v38, 0.0  ;;  %v950_v30 = vmax.f32 %v919_v39, 0.0  ;;  %v1102_v18 = vadd.f32 %v1007_v35, %v999_v4 }
 0x17a   : > { %v955_v9 = vmax.f32 %v826_v14, 0.0  ;;  %v956_v24 = vmax.f32 %v858_v61, 0.0 }
 0x17b   : > { %v1014_v11 = vmul.f32 %v1955_v23, %v949_v0  ;;  %v1015_v63 = vmul.f32 %v1955_v23, %v950_v30 }
 0x17c   : > { %v1020_v33 = vmul.f32 %v1957_v15, %v955_v9  ;;  %v1021_v46 = vmul.f32 %v1957_v15, %v956_v24 }
 0x17d   : > { %v1093_v2 = vadd.f32 %v1092_v17, %v1014_v11  ;;  %v1103_v10 = vadd.f32 %v1102_v18, %v1015_v63 }
 0x17e   : > { %v889_v54 = vpop.f32.mrf.mxu2  ;;  %v921_v48 = vpop.f32.mrf.mxu3  ;;  %v1074_v32 = vadd.f32 %v1073_v59, %v1020_v33  ;;  %v1084_v16 = vadd.f32 %v1083_v60, %v1021_v46 }
 0x17f   : > { %v890_v21 = vadd.f32 %v889_v54, %v1931_v20  ;;  %v922_v19 = vadd.f32 %v921_v48, %v1931_v20  ;;  %v828_v1 = vpop.f32.mrf.mxu0  ;;  %v860_v50 = vpop.f32.mrf.mxu1 }
 0x180   : > { %v829_v51 = vadd.f32 %v828_v1, %v1945_v58  ;;  %v861_v56 = vadd.f32 %v860_v50, %v1945_v58 }
 0x181   : > { %v957_v26 = vmax.f32 %v890_v21, 0.0  ;;  %v958_v31 = vmax.f32 %v922_v19, 0.0 }
 0x182   : > { %v963_v25 = vmax.f32 %v829_v51, 0.0  ;;  %v964_v20 = vmax.f32 %v861_v56, 0.0 }
 0x183   : > { %v1022_v7 = vmul.f32 %v1957_v15, %v957_v26  ;;  %v1023_v61 = vmul.f32 %v1957_v15, %v958_v31 }
 0x184   : > { %v1028_v55 = vmul.f32 %v1971_v29, %v963_v25  ;;  %v1029_v37 = vmul.f32 %v1971_v29, %v964_v20 }
 0x185   : > { %v1094_v22 = vadd.f32 %v1093_v2, %v1022_v7  ;;  %v1104_v9 = vadd.f32 %v1103_v10, %v1023_v61 }
 0x186   : > { %v1075_v5 = vadd.f32 %v1074_v32, %v1028_v55  ;;  %v1085_v6 = vadd.f32 %v1084_v16, %v1029_v37  ;;  %v892_v13 = vpop.f32.mrf.mxu2  ;;  %v924_v14 = vpop.f32.mrf.mxu3 }
 0x187   : > { %v893_v42 = vadd.f32 %v892_v13, %v1945_v58  ;;  %v925_v27 = vadd.f32 %v924_v14, %v1945_v58 }
 0x188   : > { %v1076_v57 = vrot.slane %v1075_v5, 4  ;;  %v1086_v47 = vrot.slane %v1085_v6, 4 }
 0x189   : > { %v965_v62 = vmax.f32 %v893_v42, 0.0  ;;  %v966_v23 = vmax.f32 %v925_v27, 0.0 }
 0x18a   : > { %v1077_v36 = vadd.f32 %v1076_v57, %v1075_v5  ;;  %v1087_v8 = vadd.f32 %v1086_v47, %v1085_v6 }
 0x18b   : > { %v1030_v24 = vmul.f32 %v1971_v29, %v965_v62  ;;  %v1031_v44 = vmul.f32 %v1971_v29, %v966_v23 }
 0x18c   : > { %v1078_v52 = vrot.slane %v1077_v36, 2  ;;  %v1088_v15 = vrot.slane %v1087_v8, 2 }
 0x18d   : > { %v1095_v38 = vadd.f32 %v1094_v22, %v1030_v24  ;;  %v1105_v39 = vadd.f32 %v1104_v9, %v1031_v44 }
 0x18e   : > { %v1079_v58 = vadd.f32 %v1078_v52, %v1077_v36  ;;  %v1089_v53 = vadd.f32 %v1088_v15, %v1087_v8 }
 0x18f   : > { %v1096_v28 = vrot.slane %v1095_v38, 4  ;;  %v1106_v43 = vrot.slane %v1105_v39, 4 }
 0x190   : > { %v1080_v45 = vrot.slane %v1079_v58, 1  ;;  %v1090_v54 = vrot.slane %v1089_v53, 1 }
 0x191   : > { %v1097_v48 = vadd.f32 %v1096_v28, %v1095_v38  ;;  %v1107_v49 = vadd.f32 %v1106_v43, %v1105_v39 }
 0x192   : > { %v1081_v12 = vadd.f32 %v1080_v45, %v1079_v58  ;;  %v1091_v21 = vadd.f32 %v1090_v54, %v1089_v53 }
 0x193   : > { %v1098_v19 = vrot.slane %v1097_v48, 2  ;;  %v1108_v1 = vrot.slane %v1107_v49, 2 }
 0x194   : > { %v1122_v33 = vadd.f32 %v1985_v40, %v1081_v12  ;;  %v1123_v46 = vadd.f32 %v1985_v40, %v1091_v21 }
 0x195   : > { %v1099_v29 = vadd.f32 %v1098_v19, %v1097_v48  ;;  %v1109_v50 = vadd.f32 %v1108_v1, %v1107_v49 }
 0x196   : > { %v1137_v59 = vrot.slane %v1122_v33, 4  ;;  %v1138_v60 = vrot.slane %v1123_v46, 3 }
 0x197   : > { %v1100_v51 = vrot.slane %v1099_v29, 1  ;;  %v1110_v56 = vrot.slane %v1109_v50, 1 }
 0x198   : > { %v1148_v3 = vsel %vm1147_vm4, %v1137_v59, %v1138_v60 }
 0x199   : > { %v1101_v34 = vadd.f32 %v1100_v51, %v1099_v29  ;;  %v1111_v35 = vadd.f32 %v1110_v56, %v1109_v50 }
 0x19b   : > { %v1124_v0 = vadd.f32 %v1985_v40, %v1101_v34  ;;  %v1125_v30 = vadd.f32 %v1985_v40, %v1111_v35 }
 0x19d   : > { %v1139_v25 = vrot.slane %v1124_v0, 2  ;;  %v1140_v20 = vrot.slane %v1125_v30, 1 }
 0x19f   : > { %v1150_v4 = vsel %vm1149_vm5, %v1139_v25, %v1140_v20 }
 0x1a0   : > { %v1152_v26 = vsel %vm1151_vm6, %v1148_v3, %v1150_v4 }
 0x1a1   : > { %v1154_v40 = vsel %vm1153_vm7, %v1999_v41, %v1152_v26 }
 0x1a2   : > { %1156 = vst [vmem:[%s274_s6] sm:$0xff] %v1154_v40 }
 0x1a3   : > { %1360 = shalt.err (!%p1357_p3)
}
 0x1a4   : > { %1283 = dma.vmem_to_hbm [thread:$0]  (%p1479_p5), %s1171_s15, 128, %s1173_s16, %s1158_s24  }
 0x1a5 PF: > { %p1289_p4 = scmp.ge.s32.totalorder %s1395_s29, 2  ;;  %s1184_s25 = sand.u32 1, %s1383_s26  }
 0x1a6   : > { %s1185_s30 = scalar_lea.sflag [#allocation4], %s1184_s25 }
 0x1a7   : > { %p1286_p7 = pnand %p1289_p4, %p1483_p6 }
 0x1a9   : > { %p1287_p8 = pneg %p1286_p7 }
 0x1ab   : > { %1378 = dma.done.wait (%p1287_p8), %s1185_s30, 128  }
 0x1ac   : > { %1380 = vsyncadd (%p1287_p8), %s1185_s30, 4294967168  ;;  %p19_p9 = scmp.ge.s32.totalorder %s1465_s8, 4   ;;  %s2103_s26 = smov %s1387_s27 }
 0x1ad   : > { %s2104_s27 = smov %s1391_s28  ;;  %s2105_s28 = smov %s1477_s11 }
 0x1ae   : > { %s2106_s29 = smov %s1465_s8  ;;  %21 = sbr.rel (!%p19_p9) target bundleno = 6 (0x6), region = 83 }
 0x1b3   :  { %1191 = vsyncpa [#allocation4], 1 }
 0x1b4   :  { %1193 = vsyncpa [#allocation4 + $0x1], 1 }

</bundles_post_ra>
